<compile_context>
chip_gen: v7x
topology: tpu7x:2x2x1
jax: 0.10.0
libtpu: 0.0.40
codegen_flags: <defaults>
</compile_context>

<pallas_src>
import functools

import jax
import jax.numpy as jnp
from jax.experimental import pallas as pl
from jax.experimental.pallas import tpu as pltpu

FOLDSEEK_MISSING_IDX = -1.0  # sentinel used by plm for missing foldseek tokens


def _round_up(x, m):
    return (x + m - 1) // m * m


def _scl_avg_classify_kernel(seq_len, x_ref, w_ref, b_ref, logits_ref, agg_ref,
                             sum_acc, cnt_acc):
    """Masked-mean pooling over the (pipelined) sequence axis + fused classifier."""
    n_step = pl.program_id(1)
    tn = x_ref.shape[1]

    @pl.when(n_step == 0)
    def _init():
        sum_acc[...] = jnp.zeros_like(sum_acc)
        cnt_acc[...] = jnp.zeros_like(cnt_acc)

    x = x_ref[...].astype(jnp.float32)                       # (tb, tn, D)
    # Mask the ragged sequence tail (last N block may extend past the real N;
    # Pallas pads it with unspecified data that must not be counted).
    row = (jax.lax.broadcasted_iota(jnp.int32, (1, tn, 1), 1) + n_step * tn)
    in_seq = row < seq_len                                   # (1, tn, 1) bool
    valid = jnp.logical_and(x != FOLDSEEK_MISSING_IDX, in_seq)
    sum_acc[...] += jnp.sum(jnp.where(valid, x, 0.0), axis=1)
    cnt_acc[...] += jnp.sum(jnp.where(valid, 1.0, 0.0), axis=1)

    @pl.when(n_step == pl.num_programs(1) - 1)
    def _finalize():
        # True divide for parity with the torch sum/count division.
        agg = sum_acc[...] / cnt_acc[...]
        agg_ref[...] = agg
        logits_ref[...] = (
            jnp.dot(agg, w_ref[...], preferred_element_type=jnp.float32)  # MXU
            + b_ref[...]                                                  # (1, C)
        )


def scl_pooling_avg_classify(target, w, b, *, tile_bytes=8 * 1024 * 1024):
    """SCLPooling forward (pooling='avg', classify=True).

    target: (B, N, D) float; w: (C, D) torch nn.Linear layout; b: (C,).
    Returns (logits (B, C), per_slice_distances=0, aggregated (B, D)).
    """
    w_t = w.T.astype(jnp.float32)              # (D, C), resident in VMEM
    b_row = b.astype(jnp.float32).reshape(1, -1)

    if target.ndim == 2:
        # torch target_pooling: 2-D targets pass through unpooled.
        agg = target.astype(jnp.float32)
        return agg @ w_t + b_row[0], 0, agg

    B, N, D = target.shape
    C = w.shape[0]
    itemsize = jnp.dtype(target.dtype).itemsize

    # Batch tile: full batch if small; otherwise up to 128 rows while keeping
    # at least 2 blocks on the "parallel" axis so v7x's second core has work.
    if B <= 8:
        tb = B
    else:
        tb = min(128, _round_up(pl.cdiv(B, 2), 8))

    # Sequence tile: ~tile_bytes per input buffer (double-buffered by the
    # pipeline), multiple of 8 sublanes; full N if it already fits.
    tn_budget = max(8, (tile_bytes // max(1, tb * D * itemsize)) // 8 * 8)
    tn = N if tn_budget >= N else tn_budget

    grid = (pl.cdiv(B, tb), pl.cdiv(N, tn))

    kernel = functools.partial(_scl_avg_classify_kernel, N)

    logits, agg = pl.pallas_call(
        kernel,
        out_shape=(
            jax.ShapeDtypeStruct((B, C), jnp.float32),
            jax.ShapeDtypeStruct((B, D), jnp.float32),
        ),
        grid_spec=pltpu.PrefetchScalarGridSpec(
            num_scalar_prefetch=0,
            grid=grid,
            in_specs=[
                pl.BlockSpec((tb, tn, D), lambda bi, ni: (bi, ni, 0)),
                pl.BlockSpec((D, C), lambda bi, ni: (0, 0)),   # resident weights
                pl.BlockSpec((1, C), lambda bi, ni: (0, 0)),   # resident bias
            ],
            out_specs=(
                pl.BlockSpec((tb, C), lambda bi, ni: (bi, 0)),
                pl.BlockSpec((tb, D), lambda bi, ni: (bi, 0)),
            ),
            scratch_shapes=[
                pltpu.VMEM((tb, D), jnp.float32),   # running masked sum
                pltpu.VMEM((tb, D), jnp.float32),   # running valid count
            ],
        ),
        compiler_params=pltpu.CompilerParams(
            dimension_semantics=("parallel", "arbitrary"),
            vmem_limit_bytes=48 * 1024 * 1024,
        ),
    )(target, w_t, b_row)

    per_slice_distances = 0  # 'avg' pooling has no SWE slice distances
    return logits, per_slice_distances, agg


if __name__ == "__main__":
    key = jax.random.PRNGKey(0)
    B, N, D, C = 2, 8, 32, 10  # batch, seq, target_shape (d_in), num_classes
    k1, k2, k3, k4 = jax.random.split(key, 4)

    # Synthetic target sequence embeddings, some residues marked "missing".
    target = jax.random.normal(k1, (B, N, D), dtype=jnp.float32)
    miss = jax.random.bernoulli(k4, 0.25, (B, N, 1))
    target = jnp.where(miss, jnp.float32(FOLDSEEK_MISSING_IDX), target)

    # Deterministic classifier params (mimic xavier_normal_ weight, uniform bias).
    std = (2.0 / (D + C)) ** 0.5
    w = std * jax.random.normal(k2, (C, D), dtype=jnp.float32)  # torch Linear layout (C, D)
    bound = 1.0 / (D ** 0.5)
    b = jax.random.uniform(k3, (C,), minval=-bound, maxval=bound, dtype=jnp.float32)

    logits, per_slice_distances, agg = scl_pooling_avg_classify(target, w, b)
    jax.block_until_ready(logits)

    # Pure-JAX reference of the same forward pass.
    mask = (target != FOLDSEEK_MISSING_IDX).astype(jnp.float32)
    agg_ref = jnp.sum(target * mask, axis=1) / jnp.sum(mask, axis=1)
    logits_ref = agg_ref @ w.T + b

    assert logits.shape == (B, C)
    assert agg.shape == (B, D)
    assert jnp.allclose(agg, agg_ref, atol=1e-5, rtol=1e-5)
    assert jnp.allclose(logits, logits_ref, atol=1e-5, rtol=1e-5)
    print("KERNEL_OK")
</pallas_src>

<mosaic_0001>
module attributes {stable_mosaic.version = 11 : i64} {
  func.func @_scl_avg_classify_kernel(%arg0: i32, %arg1: i32, %arg2: memref<2x8x32xf32, #tpu.memory_space<vmem>>, %arg3: memref<32x10xf32, #tpu.memory_space<vmem>>, %arg4: memref<1x10xf32, #tpu.memory_space<vmem>>, %arg5: memref<2x10xf32, #tpu.memory_space<vmem>>, %arg6: memref<2x32xf32, #tpu.memory_space<vmem>>, %arg7: memref<2x32xf32, #tpu.memory_space<vmem>>, %arg8: memref<2x32xf32, #tpu.memory_space<vmem>>) attributes {dimension_semantics = [#tpu.dimension_semantics<parallel>, #tpu.dimension_semantics<arbitrary>], iteration_bounds = array<i64: 1, 1>, scalar_prefetch = 0 : i64, scratch_operands = 2 : i64, tpu.core_type = #tpu.core_type<tc>, window_params = [{transform_indices = @transform_0, window_bounds = array<i64: 2, 8, 32>}, {pipeline_mode = #tpu.pipeline_mode<synchronous>, transform_indices = @transform_1, window_bounds = array<i64: 32, 10>}, {pipeline_mode = #tpu.pipeline_mode<synchronous>, transform_indices = @transform_2, window_bounds = array<i64: 1, 10>}, {transform_indices = @transform_3, window_bounds = array<i64: 2, 10>}, {transform_indices = @transform_4, window_bounds = array<i64: 2, 32>}]} {
    %c0_i32 = arith.constant 0 : i32
    %0 = arith.cmpi eq, %arg1, %c0_i32 : i32
    %1 = arith.extui %0 : i1 to i32
    %c0_i32_0 = arith.constant 0 : i32
    %2 = arith.cmpi ne, %1, %c0_i32_0 : i32
    scf.if %2 {
      %cst_19 = arith.constant 0.000000e+00 : f32
      %30 = vector.broadcast %cst_19 : f32 to vector<2x32xf32>
      %c0_20 = arith.constant 0 : index
      %c0_21 = arith.constant 0 : index
      %31 = vector.load %arg7[%c0_20, %c0_21] : memref<2x32xf32, #tpu.memory_space<vmem>>, vector<2x32xf32>
      tpu.vector_store %arg7[%c0_20, %c0_21], %30 {strides = array<i32>} : memref<2x32xf32, #tpu.memory_space<vmem>>, vector<2x32xf32>,
      %cst_22 = arith.constant 0.000000e+00 : f32
      %32 = vector.broadcast %cst_22 : f32 to vector<2x32xf32>
      %c0_23 = arith.constant 0 : index
      %c0_24 = arith.constant 0 : index
      %33 = vector.load %arg8[%c0_23, %c0_24] : memref<2x32xf32, #tpu.memory_space<vmem>>, vector<2x32xf32>
      tpu.vector_store %arg8[%c0_23, %c0_24], %32 {strides = array<i32>} : memref<2x32xf32, #tpu.memory_space<vmem>>, vector<2x32xf32>,
    } else {
    }
    %c0 = arith.constant 0 : index
    %c0_1 = arith.constant 0 : index
    %c0_2 = arith.constant 0 : index
    %3 = vector.load %arg2[%c0, %c0_1, %c0_2] : memref<2x8x32xf32, #tpu.memory_space<vmem>>, vector<2x8x32xf32>
    %4 = tpu.iota {dimensions = array<i32: 1>} : vector<1x8x1xi32>
    %c8_i32 = arith.constant 8 : i32
    %5 = arith.muli %arg1, %c8_i32 : i32
    %6 = vector.broadcast %5 : i32 to vector<1x8x1xi32>
    %7 = arith.addi %4, %6 : vector<1x8x1xi32>
    %c8_i32_3 = arith.constant 8 : i32
    %8 = vector.broadcast %c8_i32_3 : i32 to vector<1x8x1xi32>
    %9 = arith.cmpi slt, %7, %8 : vector<1x8x1xi32>
    %cst = arith.constant -1.000000e+00 : f32
    %10 = vector.broadcast %cst : f32 to vector<2x8x32xf32>
    %11 = arith.cmpf one, %3, %10 : vector<2x8x32xf32>
    %12 = vector.broadcast %9 : vector<1x8x1xi1> to vector<2x8x32xi1>
    %13 = arith.andi %11, %12 : vector<2x8x32xi1>
    %c0_4 = arith.constant 0 : index
    %c0_5 = arith.constant 0 : index
    %14 = vector.load %arg7[%c0_4, %c0_5] : memref<2x32xf32, #tpu.memory_space<vmem>>, vector<2x32xf32>
    %cst_6 = arith.constant 0.000000e+00 : f32
    %15 = vector.broadcast %cst_6 : f32 to vector<2x8x32xf32>
    %16 = arith.select %13, %3, %15 : vector<2x8x32xi1>, vector<2x8x32xf32>
    %cst_7 = arith.constant dense<0.000000e+00> : vector<2x32xf32>
    %17 = vector.multi_reduction <add>, %16, %cst_7 [1] : vector<2x8x32xf32> to vector<2x32xf32>
    %18 = arith.addf %14, %17 : vector<2x32xf32>
    %c0_8 = arith.constant 0 : index
    %c0_9 = arith.constant 0 : index
    %19 = vector.load %arg7[%c0_8, %c0_9] : memref<2x32xf32, #tpu.memory_space<vmem>>, vector<2x32xf32>
    tpu.vector_store %arg7[%c0_8, %c0_9], %18 {strides = array<i32>} : memref<2x32xf32, #tpu.memory_space<vmem>>, vector<2x32xf32>,
    %c0_10 = arith.constant 0 : index
    %c0_11 = arith.constant 0 : index
    %20 = vector.load %arg8[%c0_10, %c0_11] : memref<2x32xf32, #tpu.memory_space<vmem>>, vector<2x32xf32>
    %cst_12 = arith.constant 1.000000e+00 : f32
    %cst_13 = arith.constant 0.000000e+00 : f32
    %21 = vector.broadcast %cst_12 : f32 to vector<2x8x32xf32>
    %22 = vector.broadcast %cst_13 : f32 to vector<2x8x32xf32>
    %23 = arith.select %13, %21, %22 : vector<2x8x32xi1>, vector<2x8x32xf32>
    %cst_14 = arith.constant dense<0.000000e+00> : vector<2x32xf32>
    %24 = vector.multi_reduction <add>, %23, %cst_14 [1] : vector<2x8x32xf32> to vector<2x32xf32>
    %25 = arith.addf %20, %24 : vector<2x32xf32>
    %c0_15 = arith.constant 0 : index
    %c0_16 = arith.constant 0 : index
    %26 = vector.load %arg8[%c0_15, %c0_16] : memref<2x32xf32, #tpu.memory_space<vmem>>, vector<2x32xf32>
    tpu.vector_store %arg8[%c0_15, %c0_16], %25 {strides = array<i32>} : memref<2x32xf32, #tpu.memory_space<vmem>>, vector<2x32xf32>,
    %c0_i32_17 = arith.constant 0 : i32
    %27 = arith.cmpi eq, %arg1, %c0_i32_17 : i32
    %28 = arith.extui %27 : i1 to i32
    %c0_i32_18 = arith.constant 0 : i32
    %29 = arith.cmpi ne, %28, %c0_i32_18 : i32
    scf.if %29 {
      %c0_19 = arith.constant 0 : index
      %c0_20 = arith.constant 0 : index
      %30 = vector.load %arg7[%c0_19, %c0_20] : memref<2x32xf32, #tpu.memory_space<vmem>>, vector<2x32xf32>
      %c0_21 = arith.constant 0 : index
      %c0_22 = arith.constant 0 : index
      %31 = vector.load %arg8[%c0_21, %c0_22] : memref<2x32xf32, #tpu.memory_space<vmem>>, vector<2x32xf32>
      %32 = arith.divf %30, %31 : vector<2x32xf32>
      %c0_23 = arith.constant 0 : index
      %c0_24 = arith.constant 0 : index
      %33 = vector.load %arg6[%c0_23, %c0_24] : memref<2x32xf32, #tpu.memory_space<vmem>>, vector<2x32xf32>
      tpu.vector_store %arg6[%c0_23, %c0_24], %32 {strides = array<i32>} : memref<2x32xf32, #tpu.memory_space<vmem>>, vector<2x32xf32>,
      %c0_25 = arith.constant 0 : index
      %c0_26 = arith.constant 0 : index
      %34 = vector.load %arg3[%c0_25, %c0_26] : memref<32x10xf32, #tpu.memory_space<vmem>>, vector<32x10xf32>
      %cst_27 = arith.constant dense<0.000000e+00> : vector<2x10xf32>
      %35 = tpu.matmul %32, %34, %cst_27 {dimension_numbers = #tpu.dot_dimension_numbers<[1], [0], [0], [1], [0, 0, 1, 1], [], []>} : vector<2x32xf32>, vector<32x10xf32>, vector<2x10xf32> -> vector<2x10xf32>
      %c0_28 = arith.constant 0 : index
      %c0_29 = arith.constant 0 : index
      %36 = vector.load %arg4[%c0_28, %c0_29] : memref<1x10xf32, #tpu.memory_space<vmem>>, vector<1x10xf32>
      %37 = vector.broadcast %36 : vector<1x10xf32> to vector<2x10xf32>
      %38 = arith.addf %35, %37 : vector<2x10xf32>
      %c0_30 = arith.constant 0 : index
      %c0_31 = arith.constant 0 : index
      %39 = vector.load %arg5[%c0_30, %c0_31] : memref<2x10xf32, #tpu.memory_space<vmem>>, vector<2x10xf32>
      tpu.vector_store %arg5[%c0_30, %c0_31], %38 {strides = array<i32>} : memref<2x10xf32, #tpu.memory_space<vmem>>, vector<2x10xf32>,
    } else {
    }
    return
  }
  func.func @transform_0(%arg0: i32, %arg1: i32) -> (i32, i32, i32) {
    %c0_i32 = arith.constant 0 : i32
    %c0_i32_0 = arith.constant 0 : i32
    return %arg0, %arg1, %c0_i32 : i32, i32, i32
  }
  func.func @transform_1(%arg0: i32, %arg1: i32) -> (i32, i32) {
    %c0_i32 = arith.constant 0 : i32
    %c0_i32_0 = arith.constant 0 : i32
    %c0_i32_1 = arith.constant 0 : i32
    return %c0_i32, %c0_i32_0 : i32, i32
  }
  func.func @transform_2(%arg0: i32, %arg1: i32) -> (i32, i32) {
    %c0_i32 = arith.constant 0 : i32
    %c0_i32_0 = arith.constant 0 : i32
    %c0_i32_1 = arith.constant 0 : i32
    return %c0_i32, %c0_i32_0 : i32, i32
  }
  func.func @transform_3(%arg0: i32, %arg1: i32) -> (i32, i32) {
    %c0_i32 = arith.constant 0 : i32
    %c0_i32_0 = arith.constant 0 : i32
    return %arg0, %c0_i32 : i32, i32
  }
  func.func @transform_4(%arg0: i32, %arg1: i32) -> (i32, i32) {
    %c0_i32 = arith.constant 0 : i32
    %c0_i32_0 = arith.constant 0 : i32
    return %arg0, %c0_i32 : i32, i32
  }
}

</mosaic_0001>

<bundles_post_ra>
// kernel: tpu_custom_call.1
= control target key start
LH: loop header
LB: loop body
LE: loop exit
PB: predicated region body
PF: predicated region fallthrough
CT: control target
= control target key end

     0   :  { %10 = vsyncpa [#allocation5], 0  ;;  %vm22_vm0 = vcmask 254976   ;;  %v289_v3 = vmov 0.0|0.0   ;;  %v290_v6 = vmov 0.0   ;;  %vm42_vm1 = vcmask 261120   ;;  %s374_s0 = inlined_call_operand.vmem [shape: f32[2,8,32], index: 0, kind: input, shape index: {}]   ;;  %s375_s1 = inlined_call_operand.vmem [shape: f32[32,10], index: 1, kind: input, shape index: {}]   ;;  %s376_s2 = inlined_call_operand.vmem [shape: f32[1,10], index: 2, kind: input, shape index: {}]   ;;  %s377_s3 = inlined_call_operand.hbm [shape: f32[2,10], index: 3, kind: output, shape index: {0}]   ;;  %s378_s4 = inlined_call_operand.hbm [shape: f32[2,32], index: 4, kind: output, shape index: {1}]  }
   0x1   :  { %v96_v0 = vld [vmem:[%s375_s1] sm:$0xff]  ;;  %v97_v1 = vld [vmem:[%s375_s1 + $0x8] sm:$0xff]  ;;  %v98_v2 = vld [vmem:[%s375_s1 + $0x10] sm:$0xff]  ;;  %228 = vmatprep.subr.bf16.mxu0 %v289_v3  ;;  %23 = vst.msk [vmem:[#allocation2] sm:$0x3] %vm22_vm0, %v290_v6  ;;  %vm291_vm4 = vmmov 0  }
   0x2   :  { %v229_v4 = vpack.c.bf16 %v97_v1, %v96_v0  ;;  %v99_v5 = vld [vmem:[%s375_s1 + $0x18] sm:$0xff]  ;;  %24 = vst.msk [vmem:[#allocation3] sm:$0x3] %vm22_vm0, %v290_v6  ;;  %v25_v7 = vld [vmem:[%s374_s0] sm:$0xff]  ;;  %v26_v8 = vld [vmem:[%s374_s0 + $0x8] sm:$0xff]  ;;  %225 = vmatprep.mubr.msk.f32.mxu0 %vm291_vm4, %v290_v6 }
   0x3   :  { %v232_v9 = vpack.c.bf16 %v99_v5, %v98_v2  ;;  %vm33_vm2 = vcmp.ne.f32.partialorder %v25_v7, -1.0  ;;  %vm34_vm3 = vcmp.ne.f32.partialorder %v26_v8, -1.0 }
   0x4   :  { %11 = vsyncpa [#allocation7], 0  ;;  %230 = vmatpush3.bf16.msra.mxu0 %v229_v4  ;;  %v66_v10 = vsel %vm33_vm2, 1.0, %v290_v6  ;;  %v67_v11 = vsel %vm34_vm3, 1.0, %v290_v6  ;;  %v40_v12 = vsel %vm33_vm2, %v25_v7, 0.0  ;;  %v41_v13 = vsel %vm34_vm3, %v26_v8, 0.0 }
   0x5   :  { %231 = vmatprep.subr.bf16.mxu0 %v289_v3  ;;  %v43_v14 = vsel %vm42_vm1, %v40_v12, 0.0  ;;  %v50_v15 = vsel %vm42_vm1, %v41_v13, 0.0  ;;  %v68_v16 = vsel %vm42_vm1, %v66_v10, 0.0  ;;  %v75_v17 = vsel %vm42_vm1, %v67_v11, 0.0  ;;  %s292_s0 = smov [#allocation6]  }
   0x6   :  { %v44_v18 = vrot.slane %v43_v14, 4  ;;  %v51_v19 = vrot.slane %v50_v15, 4  ;;  %v69_v20 = vrot.slane %v68_v16, 4  ;;  %v76_v21 = vrot.slane %v75_v17, 4  ;;  %s198_s1 = sshll.u32 %s292_s0, 4  ;;  %s199_s1 = int_to_ptr.vmem [resolvable:$true] %s198_s1 }
   0x7   :  { %vm59_vm5 = vcmask 1041409   ;;  %s241_s27 = scalar_lea.vmem %s199_s1, 32  ;;  %p246_p1 = scmp.lt.s32.totalorder %s199_s1, %s199_s1 }
   0x8   :  { %233 = vmatpush3.bf16.msra.mxu0 %v232_v9  ;;  %v45_v22 = vadd.f32 %v44_v18, %v43_v14  ;;  %v52_v23 = vadd.f32 %v51_v19, %v50_v15  ;;  %v70_v24 = vadd.f32 %v69_v20, %v68_v16  ;;  %v77_v25 = vadd.f32 %v76_v21, %v75_v17  ;;  %v39_v38 = vld [vmem:[#allocation2] sm:$0x3]  ;;  %p242_p0 = scmp.ne.s32.totalorder %s199_s1, %s241_s27  ;;  %p247_p2 = scmp.lt.s32.totalorder %s241_s27, %s241_s27 }
   0x9   :  { %v65_v41 = vld [vmem:[#allocation3] sm:$0x3] }
   0xa   :  { %v46_v26 = vrot.slane %v45_v22, 2  ;;  %v53_v27 = vrot.slane %v52_v23, 2  ;;  %v71_v28 = vrot.slane %v70_v24, 2  ;;  %v78_v29 = vrot.slane %v77_v25, 2  ;;  %p248_p3 = por %p247_p2, %p246_p1 }
   0xc   :  { %v47_v30 = vadd.f32 %v46_v26, %v45_v22  ;;  %v54_v31 = vadd.f32 %v53_v27, %v52_v23  ;;  %v72_v32 = vadd.f32 %v71_v28, %v70_v24  ;;  %v79_v33 = vadd.f32 %v78_v29, %v77_v25  ;;  %p249_p4 = pnand %p248_p3, %p242_p0 }
   0xe   :  { %v48_v34 = vrot.slane %v47_v30, 1  ;;  %v55_v35 = vrot.slane %v54_v31, 1  ;;  %v73_v36 = vrot.slane %v72_v32, 1  ;;  %v80_v37 = vrot.slane %v79_v33, 1 }
  0x10   :  { %v49_v39 = vadd.f32 %v48_v34, %v47_v30  ;;  %v56_v40 = vadd.f32 %v55_v35, %v54_v31  ;;  %v74_v42 = vadd.f32 %v73_v36, %v72_v32  ;;  %v81_v43 = vadd.f32 %v80_v37, %v79_v33 }
  0x12   :  { %v60_v44 = vsel %vm59_vm5, %v56_v40, %v49_v39  ;;  %v84_v45 = vsel %vm59_vm5, %v81_v43, %v74_v42 }
  0x13   :  { %v62_v46 = vadd.f32 %v60_v44, %v39_v38  ;;  %v86_v47 = vadd.f32 %v84_v45, %v65_v41 }
  0x15   :  { %64 = vst.msk [vmem:[#allocation2] sm:$0x3] %vm22_vm0, %v62_v46  ;;  %87 = vst.msk [vmem:[#allocation3] sm:$0x3] %vm22_vm0, %v86_v47 }
  0x1c   :  { %v92_v48 = vld [vmem:[#allocation3] sm:$0x3]  ;;  %v91_v49 = vld [vmem:[#allocation2] sm:$0x3] }
  0x1d   :  { %239 = vrcp.f32 %v92_v48 }
  0x27   :  { %v240_v50 = vpop.eup %239 }
  0x28   :  { %v94_v51 = vmul.f32 %v240_v50, %v91_v49 }
  0x2a   :  { %226 = vmatmul.mubr.msk.f32.vlgmr.msra.gmra.mrb[0].mxu0 %vm42_vm1, %v94_v51  ;;  %95 = vst.msk [vmem:[#allocation6] sm:$0x3] %vm22_vm0, %v94_v51 }
  0x2b   :  { %252 = shalt.err (!%p249_p4)
}
  0x2c   :  { %s253_s30 = scalar_lea.hbm %s378_s4, 32 }
  0x2d   :  { %p254_p5 = scmp.ne.s32.totalorder %s378_s4, %s253_s30  ;;  %p257_p6 = scmp.lt.u32.totalorder %s253_s30, %s378_s4 }
  0x2f   :  { %p259_p7 = pnand %p257_p6, %p254_p5 }
  0x31   :  { %262 = shalt.err (!%p259_p7)
}
  0x32   :  { %201 = dma.vmem_to_hbm [thread:$0]  %s199_s1, 32, %s378_s4, [#allocation7]   ;;  %v210_v52 = vld [vmem:[%s376_s2] ss:$0 sm:$0xff]  ;;  %vm180_vm6 = vcmask 74752  }
  0x33   :  { %s293_s13 = smov [#allocation4]  }
  0x34   :  { %s188_s14 = sshll.u32 %s293_s13, 4  ;;  %s189_s14 = int_to_ptr.vmem [resolvable:$true] %s188_s14 }
  0x35   :  { %s263_s15 = scalar_lea.vmem %s189_s14, 32  ;;  %p268_p9 = scmp.lt.s32.totalorder %s189_s14, %s189_s14 }
  0x36   :  { %p264_p8 = scmp.ne.s32.totalorder %s189_s14, %s263_s15  ;;  %p269_p10 = scmp.lt.s32.totalorder %s263_s15, %s263_s15 }
  0x38   :  { %p270_p11 = por %p269_p10, %p268_p9 }
  0x3a   :  { %p271_p12 = pnand %p270_p11, %p264_p8 }
  0xfd   :  { %v176_v53 = vpop.f32.mrb[0].mxu0 }
  0xfe   :  { %v177_v54 = vadd.f32 %v210_v52, %v176_v53  ;;  %v227_v55 = vpop.f32.mrb[1].mxu0 }
 0x100   :  { %181 = vst.msk [vmem:[#allocation4] sm:$0x3] %vm180_vm6, %v177_v54 }
 0x101   :  { %274 = shalt.err (!%p271_p12)
}
 0x102   :  { %s275_s17 = scalar_lea.hbm %s377_s3, 32 }
 0x103   :  { %p276_p13 = scmp.ne.s32.totalorder %s377_s3, %s275_s17  ;;  %p279_p0 = scmp.lt.u32.totalorder %s275_s17, %s377_s3 }
 0x105   :  { %p281_p1 = pnand %p279_p0, %p276_p13 }
 0x107   :  { %284 = shalt.err (!%p281_p1)
}
 0x108   :  { %191 = dma.vmem_to_hbm [thread:$0]  %s189_s14, 32, %s377_s3, [#allocation5]  }
 0x109   :  { %285 = dma.done.wait [#allocation5], 32  }
 0x10a   :  { %286 = vsyncadd [#allocation5], 4294967264 }
 0x10b   :  { %287 = dma.done.wait [#allocation7], 32  }
 0x10c   :  { %288 = vsyncadd [#allocation7], 4294967264 }
 0x10d   :  { %208 = vsyncpa [#allocation5], 1 }
 0x10e   :  { %209 = vsyncpa [#allocation7], 1 }

</bundles_post_ra>
